<compile_context>
chip_gen: v5e
topology: v5e:2x2
jax: 0.10.0
libtpu: 0.0.40
codegen_flags: <defaults>
</compile_context>

<pallas_src>
import functools

import jax
import jax.numpy as jnp
from jax import lax
from jax.experimental import pallas as pl
from jax.experimental.pallas import tpu as pltpu

LANE = 128     # vreg lane width  (last dim)
SUBLANE = 8    # vreg sublane width (second-to-last dim)


def _round_up(x, m):
    return (x + m - 1) // m * m


# ---------------------------------------------------------------------------
# Kernel: the entire nn.Sequential runs on one (tm, in_dim) row tile.
# ---------------------------------------------------------------------------
def _fused_mlp_kernel(x_ref, w0_ref, tail_ref, o_ref, *, dims, w_row_offs,
                      b_row0):
    """dims[i] = (in_i, out_i).  Layer-0 weight lives in w0_ref (out0, in0);
    layers >= 1 weights and ALL biases live row-packed in tail_ref (bf16).
    All slices below are static Python ints, so they are plain VMEM views."""
    n_layers = len(dims)
    contract = (((1,), (1,)), ((), ()))          # h(.,K) . W(N,K) -> (., N)
    h = x_ref[...]                               # bf16 (tm, in0)
    for li in range(n_layers):
        in_d, out_d = dims[li]
        if li == 0:
            w = w0_ref[...]                      # bf16 (out0, in0), lane-dense
        else:
            r = w_row_offs[li]
            w = tail_ref[r:r + out_d, 0:in_d]    # bf16 (out_d, in_d)
        b = tail_ref[b_row0 + li:b_row0 + li + 1, 0:out_d].astype(jnp.float32)
        y = lax.dot_general(h, w, contract,
                            preferred_element_type=jnp.float32) + b
        if li < n_layers - 1:
            h = jnp.maximum(y, 0.0).astype(jnp.bfloat16)
        else:
            o_ref[...] = y.astype(o_ref.dtype)


# ---------------------------------------------------------------------------
# One-time parameter packing (outside the hot path).
# ---------------------------------------------------------------------------
def prepare_params(params):
    """params: list of (w, b) with w: (fan_in, fan_out) f32, b: (fan_out,) f32.

    Returns (w0, tail, meta):
      w0   : (out0, in0)  bf16  - layer-0 weight in (out, in) layout; rows are
                                  in0 wide -> lane-dense HBM reads, no padding.
      tail : (rows, tw)   bf16  - layers>=1 weights ((out, in) layout) and all
                                  biases packed row-wise, zero-filled.
      meta : static layout info consumed by kernel/wrapper.
    """
    n_layers = len(params)
    dims = tuple((int(w.shape[0]), int(w.shape[1])) for w, _ in params)

    w0 = jnp.asarray(params[0][0], jnp.float32).T.astype(jnp.bfloat16)

    tail_w = max([dims[li][0] for li in range(1, n_layers)] +
                 [d[1] for d in dims])
    blocks, w_row_offs, row = [], [0] * n_layers, 0
    for li in range(1, n_layers):
        _, out_d = dims[li]
        row = _round_up(row, SUBLANE)            # keep slices sublane-aligned
        w_row_offs[li] = row
        wt = jnp.asarray(params[li][0], jnp.float32).T.astype(jnp.bfloat16)
        blocks.append((row, wt))
        row += out_d
    b_row0 = _round_up(row, SUBLANE)
    for li in range(n_layers):
        out_d = dims[li][1]
        bb = jnp.asarray(params[li][1], jnp.float32).astype(
            jnp.bfloat16).reshape(1, out_d)
        blocks.append((b_row0 + li, bb))
    total_rows = _round_up(b_row0 + n_layers, SUBLANE)

    tail = jnp.zeros((total_rows, tail_w), jnp.bfloat16)
    for r, blk in blocks:
        tail = tail.at[r:r + blk.shape[0], :blk.shape[1]].set(blk)

    meta = dict(dims=dims, w_row_offs=tuple(w_row_offs), b_row0=b_row0)
    return w0, tail, meta


def _pick_row_tile(b8, cap):
    """b8: batch rounded up to 8.  Returns (tm, padded_batch)."""
    cap = max(SUBLANE, cap // SUBLANE * SUBLANE)
    if b8 <= cap:
        return b8, b8
    # Prefer a multiple-of-8 divisor of b8 -> zero batch-padding waste.
    tm = SUBLANE
    for cand in range(cap, SUBLANE - 1, -SUBLANE):
        if b8 % cand == 0:
            tm = cand
            break
    if tm >= max(SUBLANE, cap // 4):
        return tm, b8
    # Awkward batch size: accept bounded padding (< cap rows) to keep big tiles.
    return cap, _round_up(b8, cap)


# ---------------------------------------------------------------------------
# Forward wrapper.
# ---------------------------------------------------------------------------
def mlp_forward_fused(x, w0, tail, meta, *, row_tile=None):
    dims = meta["dims"]
    in_dim = dims[0][0]
    out_dim = dims[-1][1]

    B = x.shape[0]
    x2 = x.reshape(B, -1).astype(jnp.bfloat16)   # == x.view(x.size(0), -1)
    assert x2.shape[1] == in_dim, (x2.shape, in_dim)

    # VMEM accounting (Pallas double-buffers every input by default).
    weight_vmem = 2 * (w0.size * 2 + tail.size * 2)
    row_vmem = 2 * (in_dim * 2 + out_dim * 4)    # bf16 x row + f32 out row
    # 24 MiB sits below the default scoped-VMEM limit on v5e/v6e/v7x, so this
    # tile derivation is safe on every generation without raising the limit.
    budget = 24 << 20
    cap = int(max(SUBLANE, min(1024, (budget - weight_vmem) // max(row_vmem, 1))))
    if row_tile is not None:
        cap = min(cap, max(SUBLANE, int(row_tile)))

    b8 = _round_up(B, SUBLANE)
    tm, b_p = _pick_row_tile(b8, cap)

    if b_p == B:
        x_p = x2
    else:
        x_p = jnp.zeros((b_p, in_dim), jnp.bfloat16).at[:B].set(x2)

    grid_steps = b_p // tm

    kernel = functools.partial(
        _fused_mlp_kernel, dims=dims, w_row_offs=meta["w_row_offs"],
        b_row0=meta["b_row0"])

    in_specs = [
        pl.BlockSpec((tm, in_dim), lambda i: (i, 0)),
        # Full-array blocks (exempt from the (8,128) block-shape rule);
        # constant index_map -> Pallas keeps them VMEM-resident across steps.
        pl.BlockSpec(w0.shape, lambda i: (0, 0)),
        pl.BlockSpec(tail.shape, lambda i: (0, 0)),
    ]
    out_specs = pl.BlockSpec((tm, out_dim), lambda i: (i, 0))

    est_vmem = weight_vmem + tm * row_vmem + (1 << 20)
    vmem_limit = None if est_vmem < (12 << 20) else int(est_vmem * 1.5)

    out = pl.pallas_call(
        kernel,
        out_shape=jax.ShapeDtypeStruct((b_p, out_dim), jnp.float32),
        grid_spec=pltpu.PrefetchScalarGridSpec(
            num_scalar_prefetch=0,
            grid=(grid_steps,),
            in_specs=in_specs,
            out_specs=out_specs,
        ),
        compiler_params=pltpu.CompilerParams(
            # Batch tiles are independent.  Note (v7x): with a 1-step grid the
            # second TensorCore is idle; an N/K split of layer 0 across cores
            # would use it without duplicating weight fetches (not done here).
            dimension_semantics=(
                ("parallel",) if grid_steps > 1 else ("arbitrary",)),
            vmem_limit_bytes=vmem_limit,
        ),
    )(x_p, w0, tail)

    return out[:B]


def init_mlp_params(key, input_dim, output_dim, dim, n_blk, dtype=jnp.float32):
    """Layer shapes matching the PyTorch MLP (Linear+ReLU ... Linear)."""
    dims = [input_dim] + [dim] * (n_blk - 1) + [output_dim]
    params = []
    for fan_in, fan_out in zip(dims[:-1], dims[1:]):
        key, kw, kb = jax.random.split(key, 3)
        bound = 1.0 / jnp.sqrt(fan_in)
        w = jax.random.uniform(kw, (fan_in, fan_out), dtype, -bound, bound)
        b = jax.random.uniform(kb, (fan_out,), dtype, -bound, bound)
        params.append((w, b))
    return params


if __name__ == "__main__":
    # input_dim = C*H*W = 4*16*16 = 1024 (x is flattened per row).
    B, C, H, W = 2, 4, 16, 16
    input_dim = C * H * W
    dim = 32
    output_dim = 8
    n_blk = 3  # Linear(1024,32)+ReLU, Linear(32,32)+ReLU, Linear(32,8)

    key = jax.random.PRNGKey(0)
    kx, kp = jax.random.split(key)
    x = jax.random.normal(kx, (B, C, H, W), jnp.float32)
    params = init_mlp_params(kp, input_dim, output_dim, dim, n_blk)

    w0, tail, meta = prepare_params(params)
    fwd = jax.jit(functools.partial(mlp_forward_fused, meta=meta))
    out = jax.block_until_ready(fwd(x, w0, tail))
    assert out.shape == (B, output_dim), out.shape

    # Reference 1: exact mirror of the kernel math (bf16 operands/bias, f32 acc).
    h = x.reshape(B, -1).astype(jnp.bfloat16)
    for li, (w, b) in enumerate(params):
        y = jnp.dot(h, w.astype(jnp.bfloat16),
                    preferred_element_type=jnp.float32)
        y = y + b.astype(jnp.bfloat16).astype(jnp.float32)
        h = jnp.maximum(y, 0.0).astype(jnp.bfloat16) if li < len(params) - 1 else y
    assert jnp.allclose(out, h, atol=5e-3, rtol=5e-3), \
        float(jnp.max(jnp.abs(out - h)))

    # Reference 2: original f32 module semantics (loose tol for bf16 params).
    hf = x.reshape(B, -1)
    for li, (w, b) in enumerate(params):
        hf = hf @ w + b
        if li < len(params) - 1:
            hf = jnp.maximum(hf, 0.0)
    assert jnp.allclose(out, hf, atol=5e-2, rtol=5e-2), \
        float(jnp.max(jnp.abs(out - hf)))

    print("KERNEL_OK")
</pallas_src>

<mosaic_0001>
module attributes {stable_mosaic.version = 11 : i64} {
  func.func @_fused_mlp_kernel(%arg0: i32, %arg1: memref<8x1024xbf16, #tpu.memory_space<vmem>>, %arg2: memref<32x1024xbf16, #tpu.memory_space<vmem>>, %arg3: memref<48x32xbf16, #tpu.memory_space<vmem>>, %arg4: memref<8x8xf32, #tpu.memory_space<vmem>>) attributes {dimension_semantics = [#tpu.dimension_semantics<arbitrary>], iteration_bounds = array<i64: 1>, scalar_prefetch = 0 : i64, scratch_operands = 0 : i64, tpu.core_type = #tpu.core_type<tc>, window_params = [{transform_indices = @transform_0, window_bounds = array<i64: 8, 1024>}, {pipeline_mode = #tpu.pipeline_mode<synchronous>, transform_indices = @transform_1, window_bounds = array<i64: 32, 1024>}, {pipeline_mode = #tpu.pipeline_mode<synchronous>, transform_indices = @transform_2, window_bounds = array<i64: 48, 32>}, {transform_indices = @transform_3, window_bounds = array<i64: 8, 8>}]} {
    %c0 = arith.constant 0 : index
    %c0_0 = arith.constant 0 : index
    %0 = vector.load %arg1[%c0, %c0_0] : memref<8x1024xbf16, #tpu.memory_space<vmem>>, vector<8x1024xbf16>
    %c0_1 = arith.constant 0 : index
    %c0_2 = arith.constant 0 : index
    %1 = vector.load %arg2[%c0_1, %c0_2] : memref<32x1024xbf16, #tpu.memory_space<vmem>>, vector<32x1024xbf16>
    %c40 = arith.constant 40 : index
    %c0_3 = arith.constant 0 : index
    %2 = vector.load %arg3[%c40, %c0_3] : memref<48x32xbf16, #tpu.memory_space<vmem>>, vector<1x32xbf16>
    %3 = arith.extf %2 : vector<1x32xbf16> to vector<1x32xf32>
    %cst = arith.constant dense<0.000000e+00> : vector<8x32xf32>
    %4 = tpu.matmul %0, %1, %cst {dimension_numbers = #tpu.dot_dimension_numbers<[1], [1], [0], [0], [0, 0, 1, 0], [], []>} : vector<8x1024xbf16>, vector<32x1024xbf16>, vector<8x32xf32> -> vector<8x32xf32>
    %5 = vector.broadcast %3 : vector<1x32xf32> to vector<8x32xf32>
    %6 = arith.addf %4, %5 : vector<8x32xf32>
    %cst_4 = arith.constant 0.000000e+00 : f32
    %7 = vector.broadcast %cst_4 : f32 to vector<8x32xf32>
    %8 = arith.maximumf %6, %7 : vector<8x32xf32>
    %9 = arith.truncf %8 : vector<8x32xf32> to vector<8x32xbf16>
    %c0_5 = arith.constant 0 : index
    %c0_6 = arith.constant 0 : index
    %10 = vector.load %arg3[%c0_5, %c0_6] : memref<48x32xbf16, #tpu.memory_space<vmem>>, vector<32x32xbf16>
    %c41 = arith.constant 41 : index
    %c0_7 = arith.constant 0 : index
    %11 = vector.load %arg3[%c41, %c0_7] : memref<48x32xbf16, #tpu.memory_space<vmem>>, vector<1x32xbf16>
    %12 = arith.extf %11 : vector<1x32xbf16> to vector<1x32xf32>
    %cst_8 = arith.constant dense<0.000000e+00> : vector<8x32xf32>
    %13 = tpu.matmul %9, %10, %cst_8 {dimension_numbers = #tpu.dot_dimension_numbers<[1], [1], [0], [0], [0, 0, 1, 0], [], []>} : vector<8x32xbf16>, vector<32x32xbf16>, vector<8x32xf32> -> vector<8x32xf32>
    %14 = vector.broadcast %12 : vector<1x32xf32> to vector<8x32xf32>
    %15 = arith.addf %13, %14 : vector<8x32xf32>
    %cst_9 = arith.constant 0.000000e+00 : f32
    %16 = vector.broadcast %cst_9 : f32 to vector<8x32xf32>
    %17 = arith.maximumf %15, %16 : vector<8x32xf32>
    %18 = arith.truncf %17 : vector<8x32xf32> to vector<8x32xbf16>
    %c32 = arith.constant 32 : index
    %c0_10 = arith.constant 0 : index
    %19 = vector.load %arg3[%c32, %c0_10] : memref<48x32xbf16, #tpu.memory_space<vmem>>, vector<8x32xbf16>
    %c42 = arith.constant 42 : index
    %c0_11 = arith.constant 0 : index
    %20 = vector.load %arg3[%c42, %c0_11] : memref<48x32xbf16, #tpu.memory_space<vmem>>, vector<1x8xbf16>
    %21 = arith.extf %20 : vector<1x8xbf16> to vector<1x8xf32>
    %cst_12 = arith.constant dense<0.000000e+00> : vector<8x8xf32>
    %22 = tpu.matmul %18, %19, %cst_12 {dimension_numbers = #tpu.dot_dimension_numbers<[1], [1], [0], [0], [0, 0, 1, 0], [], []>} : vector<8x32xbf16>, vector<8x32xbf16>, vector<8x8xf32> -> vector<8x8xf32>
    %23 = vector.broadcast %21 : vector<1x8xf32> to vector<8x8xf32>
    %24 = arith.addf %22, %23 : vector<8x8xf32>
    %c0_13 = arith.constant 0 : index
    %c0_14 = arith.constant 0 : index
    %25 = vector.load %arg4[%c0_13, %c0_14] : memref<8x8xf32, #tpu.memory_space<vmem>>, vector<8x8xf32>
    tpu.vector_store %arg4[%c0_13, %c0_14], %24 {strides = array<i32>} : memref<8x8xf32, #tpu.memory_space<vmem>>, vector<8x8xf32>,
    return
  }
  func.func @transform_0(%arg0: i32) -> (i32, i32) {
    %c0_i32 = arith.constant 0 : i32
    %c0_i32_0 = arith.constant 0 : i32
    return %arg0, %c0_i32 : i32, i32
  }
  func.func @transform_1(%arg0: i32) -> (i32, i32) {
    %c0_i32 = arith.constant 0 : i32
    %c0_i32_0 = arith.constant 0 : i32
    %c0_i32_1 = arith.constant 0 : i32
    return %c0_i32, %c0_i32_0 : i32, i32
  }
  func.func @transform_2(%arg0: i32) -> (i32, i32) {
    %c0_i32 = arith.constant 0 : i32
    %c0_i32_0 = arith.constant 0 : i32
    %c0_i32_1 = arith.constant 0 : i32
    return %c0_i32, %c0_i32_0 : i32, i32
  }
  func.func @transform_3(%arg0: i32) -> (i32, i32) {
    %c0_i32 = arith.constant 0 : i32
    %c0_i32_0 = arith.constant 0 : i32
    return %arg0, %c0_i32 : i32, i32
  }
}

</mosaic_0001>

<bundles_post_ra>
// kernel: mlp_forward_fused.1
= control target key start
LH: loop header
LB: loop body
LE: loop exit
PB: predicated region body
PF: predicated region fallthrough
CT: control target
= control target key end

     0   :  { %vm267_vm0 = vcmask 261120   ;;  %vm315_vm1 = vcmask 64512   ;;  %s564_s1 = inlined_call_operand.vmem [shape: bf16[32,1024], index: 1, kind: input, shape index: {}]   ;;  %s565_s0 = inlined_call_operand.vmem [shape: bf16[8,1024], index: 0, kind: input, shape index: {}]   ;;  %s566_s2 = inlined_call_operand.vmem [shape: bf16[48,32], index: 2, kind: input, shape index: {}]   ;;  %s567_s3 = inlined_call_operand.vmem [shape: f32[8,8], index: 3, kind: output, shape index: {}]  }
   0x1   :  { %v355_v0 = vld [vmem:[%s564_s1 + $0x40] sm:$0xf]  ;;  %v403_v2 = vld [vmem:[%s564_s1 + $0x44] sm:$0xf]  ;;  %v363_v5 = vld [vmem:[%s564_s1 + $0x48] sm:$0xf] }
   0x2   :  { %v407_v1 = vld [vmem:[%s564_s1 + $0x5c] sm:$0xf0]  ;;  %v357_v4 = vld [vmem:[%s564_s1 + $0x60] sm:$0xf0]  ;;  %v408_v6 = vld [vmem:[%s564_s1 + $0x64] sm:$0xf0] }
   0x3   :  { %v356_v3 = vor.u32 %v407_v1, %v355_v0  ;;  %v360_v7 = vor.u32 %v403_v2, %v357_v4  ;;  %v364_v8 = vor.u32 %v408_v6, %v363_v5  ;;  %v404_v9 = vld [vmem:[%s564_s1 + $0x4c] sm:$0xf]  ;;  %v323_v12 = vld [vmem:[%s564_s1] sm:$0xf]  ;;  %v395_v14 = vld [vmem:[%s564_s1 + $0x4] sm:$0xf] }
   0x4   :  { %v365_v10 = vld [vmem:[%s564_s1 + $0x68] sm:$0xf0]  ;;  %v399_v13 = vld [vmem:[%s564_s1 + $0x1c] sm:$0xf0]  ;;  %v325_v15 = vld [vmem:[%s564_s1 + $0x20] sm:$0xf0] }
   0x5   :  { %152 = vmatpush.bf16.xpose.msra.mxu0 %v356_v3  ;;  %v368_v11 = vor.u32 %v404_v9, %v365_v10  ;;  %165 = vmatpush.bf16.xpose.msra.mxu1 %v360_v7  ;;  %v331_v16 = vld [vmem:[%s564_s1 + $0x8] sm:$0xf]  ;;  %v396_v18 = vld [vmem:[%s564_s1 + $0xc] sm:$0xf]  ;;  %v15_v20 = vld [vmem:[%s565_s0] sm:$0xff]  ;;  %v324_v24 = vor.u32 %v399_v13, %v323_v12  ;;  %v328_v28 = vor.u32 %v395_v14, %v325_v15 }
   0x6   :  { %178 = vmatpush.bf16.xpose.msra.mxu2 %v364_v8  ;;  %v400_v17 = vld [vmem:[%s564_s1 + $0x24] sm:$0xf0]  ;;  %v333_v19 = vld [vmem:[%s564_s1 + $0x28] sm:$0xf0]  ;;  %v379_v21 = vld [vmem:[%s564_s1 + $0x58] sm:$0xf]  ;;  %v42_v35 = vunpack.c.l.b16 %v15_v20  ;;  %v43_v38 = vunpack.c.h.b16 %v15_v20 }
   0x7   :  { %191 = vmatpush.bf16.xpose.msra.mxu3 %v368_v11  ;;  %v410_v22 = vld [vmem:[%s564_s1 + $0x74] sm:$0xf0]  ;;  %v371_v23 = vld [vmem:[%s564_s1 + $0x50] sm:$0xf]  ;;  %v405_v26 = vld [vmem:[%s564_s1 + $0x54] sm:$0xf]  ;;  %v332_v29 = vor.u32 %v400_v17, %v331_v16  ;;  %v336_v33 = vor.u32 %v396_v18, %v333_v19 }
   0x8   :  { %v409_v25 = vld [vmem:[%s564_s1 + $0x6c] sm:$0xf0]  ;;  %v373_v27 = vld [vmem:[%s564_s1 + $0x70] sm:$0xf0]  ;;  %v16_v30 = vld [vmem:[%s565_s0 + $0x8] sm:$0xff]  ;;  %v380_v34 = vor.u32 %v410_v22, %v379_v21  ;;  %v50_v42 = vpack.c.b16 %v42_v35, %v42_v35  ;;  %v51_v46 = vpack.c.b16 %v43_v38, %v43_v38 }
   0x9   :  { %v406_v31 = vld [vmem:[%s564_s1 + $0x5c] sm:$0xf]  ;;  %v372_v36 = vor.u32 %v409_v25, %v371_v23  ;;  %v376_v37 = vor.u32 %v405_v26, %v373_v27  ;;  %v44_v39 = vunpack.c.l.b16 %v16_v30  ;;  %v45_v41 = vunpack.c.h.b16 %v16_v30  ;;  %v347_v43 = vld [vmem:[%s564_s1 + $0x18] sm:$0xf]  ;;  %v339_v45 = vld [vmem:[%s564_s1 + $0x10] sm:$0xf] }
   0xa   :  { %v381_v32 = vld [vmem:[%s564_s1 + $0x78] sm:$0xf0]  ;;  %v402_v44 = vld [vmem:[%s564_s1 + $0x34] sm:$0xf0]  ;;  %v401_v48 = vld [vmem:[%s564_s1 + $0x2c] sm:$0xf0] }
   0xb   :  { %v384_v40 = vor.u32 %v406_v31, %v381_v32  ;;  %v52_v47 = vpack.c.b16 %v44_v39, %v44_v39  ;;  %v397_v49 = vld [vmem:[%s564_s1 + $0x14] sm:$0xf]  ;;  %v53_v51 = vpack.c.b16 %v45_v41, %v45_v41  ;;  %v398_v52 = vld [vmem:[%s564_s1 + $0x1c] sm:$0xf]  ;;  %v348_v54 = vor.u32 %v402_v44, %v347_v43  ;;  %v412_v4 = vld [vmem:[%s566_s2 + $0x8] sm:$0xff] }
   0xc   :  { %v341_v50 = vld [vmem:[%s564_s1 + $0x30] sm:$0xf0]  ;;  %v349_v53 = vld [vmem:[%s564_s1 + $0x38] sm:$0xf0]  ;;  %v340_v55 = vor.u32 %v401_v48, %v339_v45  ;;  %v275_v5 = vsel %vm267_vm0, %v412_v4, 0  ;;  %v411_v6 = vld [vmem:[%s566_s2] sm:$0xff] }
   0xd   :  { %153 = vmatpush.bf16.xpose.msra.mxu0 %v324_v24  ;;  %166 = vmatpush.bf16.xpose.msra.mxu1 %v328_v28  ;;  %v344_v56 = vor.u32 %v397_v49, %v341_v50  ;;  %v352_v57 = vor.u32 %v398_v52, %v349_v53  ;;  %v17_v58 = vld [vmem:[%s565_s0 + $0x10] sm:$0xff]  ;;  %v18_v59 = vld [vmem:[%s565_s0 + $0x18] sm:$0xff]  ;;  %v272_v8 = vsel %vm267_vm0, %v411_v6, 0 }
   0xe   :  { %179 = vmatpush.bf16.xpose.msra.mxu2 %v332_v29  ;;  %v46_v60 = vunpack.c.l.b16 %v17_v58  ;;  %v47_v61 = vunpack.c.h.b16 %v17_v58  ;;  %v48_v62 = vunpack.c.l.b16 %v18_v59  ;;  %v49_v63 = vunpack.c.h.b16 %v18_v59  ;;  %v35_v7 = vld [vmem:[%s566_s2 + $0x14] sm:$0x1]  ;;  %v292_v12 = vld [vmem:[%s566_s2 + $0x10] sm:$0xf]  ;;  %v293_v45 = vld [vmem:[%s566_s2 + $0x14] sm:$0x2] }
   0xf   :  { %192 = vmatpush.bf16.xpose.msra.mxu3 %v336_v33  ;;  %v36_v9 = vunpack.c.l.bf16 %v35_v7  ;;  %v300_v14 = vsel %vm267_vm0, %v292_v12, 0 }
  0x10   :  { %v54_v0 = vpack.c.b16 %v46_v60, %v46_v60  ;;  %v55_v1 = vpack.c.b16 %v47_v61, %v47_v61  ;;  %v56_v2 = vpack.c.b16 %v48_v62, %v48_v62  ;;  %v57_v3 = vpack.c.b16 %v49_v63, %v49_v63 }
  0x11   :  { %v37_v10 = vperm.slane %v36_v9, 0  ;;  %v256_v39 = vperm.slane %v36_v9, 1 }
  0x14   :  { %154 = vmatmul.bf16.vlgmr.msra.gmra.mxu0 %v50_v42  ;;  %167 = vmatmul.bf16.vlgmr.msra.gmra.mxu1 %v51_v46  ;;  %v294_v46 = vunpack.c.l.bf16 %v293_v45 }
  0x15   :  { %204 = vmatpush.bf16.xpose.msrb.mxu0 %v372_v36  ;;  %217 = vmatpush.bf16.xpose.msrb.mxu1 %v376_v37 }
  0x16   :  { %230 = vmatpush.bf16.xpose.msrb.mxu2 %v380_v34  ;;  %193 = vmatmul.bf16.vlgmr.msra.gmra.mxu3 %v53_v51 }
  0x17   :  { %243 = vmatpush.bf16.xpose.msrb.mxu3 %v384_v40  ;;  %180 = vmatmul.bf16.vlgmr.msra.gmra.mxu2 %v52_v47  ;;  %v295_v47 = vperm.slane %v294_v46, 2 }
  0x1d   :  { %205 = vmatpush.bf16.xpose.msrb.mxu0 %v340_v55  ;;  %218 = vmatpush.bf16.xpose.msrb.mxu1 %v344_v56 }
  0x1e   :  { %231 = vmatpush.bf16.xpose.msrb.mxu2 %v348_v54 }
  0x1f   :  { %244 = vmatpush.bf16.xpose.msrb.mxu3 %v352_v57 }
  0x24   :  { %206 = vmatmul.bf16.vlgmr.msrb.gmra.mxu0 %v54_v0  ;;  %219 = vmatmul.bf16.vlgmr.msrb.gmra.mxu1 %v55_v1 }
  0x25   :  { %283 = vmatpush.bf16.xpose.msra.mxu0 %v275_v5  ;;  %309 = vmatpush.bf16.xpose.msra.mxu1 %v300_v14 }
  0x26   :  { %245 = vmatmul.bf16.vlgmr.msrb.gmra.mxu3 %v57_v3 }
  0x27   :  { %232 = vmatmul.bf16.vlgmr.msrb.gmra.mxu2 %v56_v2 }
  0x2d   :  { %284 = vmatpush.bf16.xpose.msra.mxu0 %v272_v8 }
  0x91   :  { %v155_v11 = vpop.f32.mrf.mxu0  ;;  %v168_v13 = vpop.f32.mrf.mxu1 }
  0x92   :  { %v156_v15 = vadd.f32 %v155_v11, %v37_v10 }
  0x94   :  { %v169_v17 = vadd.f32 %v168_v13, %v156_v15 }
  0x99   :  { %v194_v18 = vpop.f32.mrf.mxu3  ;;  %v157_v19 = vpop.f32.mrf.mxu0 }
  0x9a   :  { %v181_v16 = vpop.f32.mrf.mxu2  ;;  %v170_v20 = vpop.f32.mrf.mxu1 }
  0x9b   :  { %v182_v21 = vadd.f32 %v181_v16, %v169_v17 }
  0x9d   :  { %v195_v23 = vadd.f32 %v194_v18, %v182_v21 }
  0xa1   :  { %v196_v24 = vpop.f32.mrf.mxu3  ;;  %v207_v25 = vpop.f32.mrf.mxu0 }
  0xa2   :  { %v183_v22 = vpop.f32.mrf.mxu2  ;;  %v220_v26 = vpop.f32.mrf.mxu1  ;;  %v208_v27 = vadd.f32 %v207_v25, %v195_v23 }
  0xa4   :  { %v221_v28 = vadd.f32 %v220_v26, %v208_v27 }
  0xa9   :  { %v246_v31 = vpop.f32.mrf.mxu3  ;;  %v209_v32 = vpop.f32.mrf.mxu0 }
  0xaa   :  { %v233_v29 = vpop.f32.mrf.mxu2  ;;  %v222_v33 = vpop.f32.mrf.mxu1 }
  0xab   :  { %v234_v30 = vadd.f32 %v233_v29, %v221_v28 }
  0xad   :  { %v247_v34 = vadd.f32 %v246_v31, %v234_v30 }
  0xaf   :  { %v250_v35 = vmax.f32 %v247_v34, 0.0 }
  0xb1   :  { %v251_v36 = vpack.c.bf16 %v250_v35, %v250_v35  ;;  %v248_v38 = vpop.f32.mrf.mxu3 }
  0xb2   :  { %v235_v37 = vpop.f32.mrf.mxu2 }
  0xb3   :  { %393 = vmatmul.msk.bf16.vlgmr.msra.gmra.mxu0 %vm267_vm0, %v251_v36 }
 0x130   :  { %v286_v40 = vpop.f32.mrf.mxu0 }
 0x131   :  { %v287_v41 = vadd.f32 %v286_v40, %v256_v39 }
 0x133   :  { %v290_v42 = vmax.f32 %v287_v41, 0.0 }
 0x135   :  { %v291_v43 = vpack.c.bf16 %v290_v42, %v290_v42 }
 0x137   :  { %394 = vmatmul.msk.bf16.vlgmr.msra.gmra.mxu1 %vm267_vm0, %v291_v43 }
 0x138   :  { %v288_v44 = vpop.f32.mrf.mxu0 }
 0x1b4   :  { %v311_v48 = vpop.f32.mrf.mxu1 }
 0x1b5   :  { %v312_v49 = vadd.f32 %v311_v48, %v295_v47 }
 0x1b7   :  { %316 = vst.msk [vmem:[%s567_s3] sm:$0xff] %vm315_vm1, %v312_v49 }
 0x1bc   :  { %v313_v50 = vpop.f32.mrf.mxu1 }

</bundles_post_ra>
